<compile_context>
chip_gen: v5e
topology: v5e:2x2
jax: 0.10.0
libtpu: 0.0.40
codegen_flags: <defaults>
</compile_context>

<pallas_src>
import jax
import jax.numpy as jnp
from jax.experimental import pallas as pl
from jax.experimental.pallas import tpu as pltpu


def _relu_kernel(x_ref, o_ref):
    # Single fused elementwise op per block; VPU work is trivially hidden
    # under the HBM stream.
    o_ref[...] = jnp.maximum(x_ref[...], 0)


def _choose_tiles(size, dtype_bytes=4):
    """Pick (TR, TC) block dims for the flattened (rows, TC) view.

    TC: lane axis, multiple of 128 (dense, unmasked vector stores).
    TR: sublane axis, multiple of 8.
    Budget: in + out, each double-buffered => ~4 * TR*TC*dtype_bytes of VMEM.
    Target <= ~8 MiB total (block <= 2 MiB), which fits every generation's
    default scoped VMEM and leaves a deep pipeline for large tensors.
    """
    TC = 1024
    TR = 512  # 512*1024*4 B = 2 MiB block for f32
    # Shrink the block for small inputs so we don't pad a tiny tensor up to
    # a full 2 MiB block (keeps the padded copy negligible).
    while TR > 8 and size <= (TR // 2) * TC:
        TR //= 2
    while TC > 128 and size <= TR * (TC // 2):
        TC //= 2
    return TR, TC


def relu(x):
    """Elementwise ReLU on an arbitrarily-shaped tensor (matches TritonReLU)."""
    orig_shape = x.shape
    orig_dtype = x.dtype
    size = x.size

    TR, TC = _choose_tiles(size, dtype_bytes=jnp.dtype(orig_dtype).itemsize)
    block = TR * TC
    padded = ((size + block - 1) // block) * block

    xf = x.reshape(-1)
    if padded != size:
        xf = jnp.pad(xf, (0, padded - size))  # ReLU(0) == 0, sliced off below

    rows = padded // TC
    x2 = xf.reshape(rows, TC)
    grid = (rows // TR,)

    out2 = pl.pallas_call(
        _relu_kernel,
        out_shape=jax.ShapeDtypeStruct((rows, TC), orig_dtype),
        grid_spec=pltpu.PrefetchScalarGridSpec(
            num_scalar_prefetch=0,
            grid=grid,
            in_specs=[pl.BlockSpec((TR, TC), lambda i: (i, 0))],
            out_specs=pl.BlockSpec((TR, TC), lambda i: (i, 0)),
        ),
        compiler_params=pltpu.CompilerParams(
            # Independent blocks: let megacore (v7x: 2 TCs) split the grid.
            dimension_semantics=("parallel",),
            # Explicit cap that fits all generations; ~8 MiB is actually used.
            vmem_limit_bytes=32 * 1024 * 1024,
        ),
    )(x2)

    out = out2.reshape(-1)
    if padded != size:
        out = out[:size]
    return out.reshape(orig_shape)


if __name__ == "__main__":
    # Deterministic small input consistent with the module's usage in a CNN:
    # (batch=2, channels=4, spatial=16x16), float32.
    key = jax.random.PRNGKey(0)
    x = jax.random.normal(key, (2, 4, 16, 16), dtype=jnp.float32)

    out = relu(x)
    out = jax.block_until_ready(out)

    ref = jnp.maximum(x, 0.0)
    assert out.shape == x.shape and out.dtype == x.dtype
    assert jnp.allclose(out, ref, atol=0.0, rtol=0.0)

    print("KERNEL_OK")
</pallas_src>

<mosaic_0001>
module attributes {stable_mosaic.version = 11 : i64} {
  func.func @_relu_kernel(%arg0: i32, %arg1: memref<8x256xf32, #tpu.memory_space<vmem>>, %arg2: memref<8x256xf32, #tpu.memory_space<vmem>>) attributes {dimension_semantics = [#tpu.dimension_semantics<parallel>], iteration_bounds = array<i64: 1>, scalar_prefetch = 0 : i64, scratch_operands = 0 : i64, tpu.core_type = #tpu.core_type<tc>, window_params = [{transform_indices = @transform_0, window_bounds = array<i64: 8, 256>}, {transform_indices = @transform_1, window_bounds = array<i64: 8, 256>}]} {
    %c0 = arith.constant 0 : index
    %c0_0 = arith.constant 0 : index
    %0 = vector.load %arg1[%c0, %c0_0] : memref<8x256xf32, #tpu.memory_space<vmem>>, vector<8x256xf32>
    %cst = arith.constant 0.000000e+00 : f32
    %1 = vector.broadcast %cst : f32 to vector<8x256xf32>
    %2 = arith.maximumf %0, %1 : vector<8x256xf32>
    %c0_1 = arith.constant 0 : index
    %c0_2 = arith.constant 0 : index
    %3 = vector.load %arg2[%c0_1, %c0_2] : memref<8x256xf32, #tpu.memory_space<vmem>>, vector<8x256xf32>
    tpu.vector_store %arg2[%c0_1, %c0_2], %2 {strides = array<i32>} : memref<8x256xf32, #tpu.memory_space<vmem>>, vector<8x256xf32>,
    return
  }
  func.func @transform_0(%arg0: i32) -> (i32, i32) {
    %c0_i32 = arith.constant 0 : i32
    %c0_i32_0 = arith.constant 0 : i32
    return %arg0, %c0_i32 : i32, i32
  }
  func.func @transform_1(%arg0: i32) -> (i32, i32) {
    %c0_i32 = arith.constant 0 : i32
    %c0_i32_0 = arith.constant 0 : i32
    return %arg0, %c0_i32 : i32, i32
  }
}

</mosaic_0001>

<bundles_post_ra>
// kernel: tpu_custom_call.1
= control target key start
LH: loop header
LB: loop body
LE: loop exit
PB: predicated region body
PF: predicated region fallthrough
CT: control target
= control target key end

     0   :  { %6 = vsyncpa [#allocation3], 0  ;;  %s118_s0 = inlined_call_operand.hbm [shape: f32[8,256], index: 0, kind: input, shape index: {}]   ;;  %s119_s1 = inlined_call_operand.hbm [shape: f32[8,256], index: 1, kind: output, shape index: {}]  }
   0x1   :  { %7 = vsyncpa [#allocation4], 0  ;;  %s13_s8 = sshll.u32 %s118_s0, 4  ;;  %s100_s9 = smov [#allocation2]   ;;  %s14_s8 = int_to_ptr.hbm [resolvable:$true] %s13_s8 }
   0x2   :  { %s15_s10 = sshll.u32 %s100_s9, 4  ;;  %s16_s10 = int_to_ptr.vmem [resolvable:$true] %s15_s10 }
   0x3   :  { %18 = dma.hbm_to_vmem [thread:$0]  %s14_s8, 256, %s16_s10, [#allocation3]  }
   0x4   :  { %96 = dma.done.wait [#allocation3], 256  }
   0x5   :  { %97 = vsyncadd [#allocation3], 4294967040  ;;  %s101_s11 = smov [#allocation5]   ;;  %s36_s15 = sshll.u32 %s119_s1, 4  ;;  %v23_v0 = vld [vmem:[#allocation2] sm:$0xff]  ;;  %v24_v1 = vld [vmem:[#allocation2 + $0x8] sm:$0xff]  ;;  %s37_s15 = int_to_ptr.hbm [resolvable:$true] %s36_s15 }
   0x6   :  { %s34_s12 = sshll.u32 %s101_s11, 4  ;;  %v25_v2 = vmax.f32 %v23_v0, 0.0  ;;  %v26_v3 = vmax.f32 %v24_v1, 0.0  ;;  %s35_s12 = int_to_ptr.vmem [resolvable:$true] %s34_s12 }
   0x8   :  { %27 = vst [vmem:[#allocation5] sm:$0xff] %v25_v2 }
   0x9   :  { %28 = vst [vmem:[#allocation5 + $0x8] sm:$0xff] %v26_v3 }
   0xa   :  { %39 = dma.vmem_to_hbm [thread:$0]  %s35_s12, 256, %s37_s15, [#allocation4]  }
   0xb   :  { %98 = dma.done.wait [#allocation4], 256  }
   0xc   :  { %99 = vsyncadd [#allocation4], 4294967040 }
   0xd   :  { %44 = vsyncpa [#allocation3], 1 }
   0xe   :  { %45 = vsyncpa [#allocation4], 1 }

</bundles_post_ra>
